<compile_context>
chip_gen: v7x
topology: tpu7x:2x2x1
jax: 0.10.0
libtpu: 0.0.40
codegen_flags: <defaults>
</compile_context>

<pallas_src>
import functools
import math

import jax
import jax.numpy as jnp
from jax import lax
from jax.experimental import pallas as pl
from jax.experimental.pallas import tpu as pltpu


# -----------------------------------------------------------------------------
# Pass 1: K/V projections (once per (batch, seq-tile); reused by every q tile).
# -----------------------------------------------------------------------------
def _kv_proj_kernel(k_ref, v_ref, wk_ref, bk_ref, wv_ref, bv_ref, kp_ref, vp_ref):
    kp_ref[0] = (jnp.dot(k_ref[0], wk_ref[...], preferred_element_type=jnp.float32)
                 + bk_ref[...]).astype(kp_ref.dtype)
    vp_ref[0] = (jnp.dot(v_ref[0], wv_ref[...], preferred_element_type=jnp.float32)
                 + bv_ref[...]).astype(vp_ref.dtype)


# -----------------------------------------------------------------------------
# Pass 2: flash attention (online softmax over KV tiles) + fused output proj.
# -----------------------------------------------------------------------------
def _flash_attn_kernel(q_ref, k_ref, v_ref,
                       wq_ref, bq_ref, wo_ref, bo_ref,
                       out_ref,
                       q_proj, m_scr, l_scr, acc,
                       *, nhead, head_dim, compute_dtype):
    """Grid = (batch, num_q_blocks, num_kv_blocks); KV axis innermost/arbitrary."""
    ki = pl.program_id(2)

    # --- init per (b, qi): Q projection (scale folded into wq/bq) + flash state ---
    @pl.when(ki == 0)
    def _():
        q_proj[...] = (jnp.dot(q_ref[0], wq_ref[...],
                               preferred_element_type=jnp.float32)
                       + bq_ref[...]).astype(compute_dtype)
        m_scr[...] = jnp.full(m_scr.shape, -jnp.inf, dtype=m_scr.dtype)
        l_scr[...] = jnp.zeros(l_scr.shape, dtype=l_scr.dtype)
        acc[...] = jnp.zeros(acc.shape, dtype=acc.dtype)

    k_blk = k_ref[0]                                   # (block_k, D) compute dtype
    v_blk = v_ref[0]                                   # (block_k, D) compute dtype

    # --- per-head online-softmax update for this KV tile (nhead is small/static) ---
    for h in range(nhead):
        sl = slice(h * head_dim, (h + 1) * head_dim)   # 128-lane aligned slab
        qh = q_proj[:, sl]                             # (bq, hd)
        kh = k_blk[:, sl]                              # (bk, hd)
        vh = v_blk[:, sl]                              # (bk, hd)

        # scores = qh @ kh^T: contract last dims directly (no materialized .T).
        s = lax.dot_general(qh, kh, (((1,), (1,)), ((), ())),
                            preferred_element_type=jnp.float32)   # (bq, bk) f32

        m_prev = m_scr[h]                              # (bq, 1) f32
        m_new = jnp.maximum(m_prev, jnp.max(s, axis=-1, keepdims=True))
        alpha = jnp.exp(m_prev - m_new)                # rescale factor
        p = jnp.exp(s - m_new)                         # unnormalized probs (f32)

        l_scr[h] = alpha * l_scr[h] + jnp.sum(p, axis=-1, keepdims=True)
        acc[:, sl] = alpha * acc[:, sl] + jnp.dot(
            p.astype(compute_dtype), vh, preferred_element_type=jnp.float32)
        m_scr[h] = m_new

    # --- finalize: normalize per head, then ONE full-contraction output matmul ---
    @pl.when(ki == pl.num_programs(2) - 1)
    def _():
        for h in range(nhead):
            sl = slice(h * head_dim, (h + 1) * head_dim)
            acc[:, sl] = acc[:, sl] * pl.reciprocal(l_scr[h], approx=True)
        o = acc[...].astype(compute_dtype)             # (bq, D), heads in lane slabs
        out_ref[0] = (jnp.dot(o, wo_ref[...], preferred_element_type=jnp.float32)
                      + bo_ref[...]).astype(out_ref.dtype)


def _vmem_limit_bytes(pipelined_bytes, resident_bytes, scratch_bytes):
    # double-buffered pipelined blocks + resident weights + scratch, with margin;
    # capped with headroom for v7x's 64 MiB physical VMEM per TensorCore.
    need = 2 * pipelined_bytes + resident_bytes + scratch_bytes
    need = int(need * 1.5) + (1 << 20)
    return min(max(need, 8 << 20), 48 << 20)


def multi_head_attention(query, key, value, params, *, nhead,
                         block_q=128, block_k=128, compute_dtype=jnp.bfloat16):
    """query/key/value: (B, S, D). params: PyTorch-layout weights W:(out,in), b:(1,out)."""
    B, S, D = query.shape
    assert D % nhead == 0
    head_dim = D // nhead

    block_q = min(block_q, S)
    block_k = min(block_k, S)
    assert S % block_q == 0 and S % block_k == 0, "S must be divisible by block sizes"
    num_q_blocks = S // block_q
    num_kv_blocks = S // block_k

    # PyTorch Linear computes x @ W.T + b: pre-transpose once on the host, cast to
    # the MXU compute dtype, and fold the 1/sqrt(head_dim) scale into Wq/bq.
    scale = 1.0 / math.sqrt(head_dim)
    wq_t = (params["wq"].T * scale).astype(compute_dtype)
    bq = (params["bq"] * scale).astype(jnp.float32)
    wk_t = params["wk"].T.astype(compute_dtype)
    bk = params["bk"].astype(jnp.float32)
    wv_t = params["wv"].T.astype(compute_dtype)
    bv = params["bv"].astype(jnp.float32)
    wo_t = params["wo"].T.astype(compute_dtype)
    bo = params["bo"].astype(jnp.float32)

    # Cast activations on the host: half the DMA bytes / VMEM block size.
    q_c = query.astype(compute_dtype)
    k_c = key.astype(compute_dtype)
    v_c = value.astype(compute_dtype)

    c_sz = jnp.dtype(compute_dtype).itemsize
    o_sz = query.dtype.itemsize
    resident = pl.BlockSpec(memory_space=pltpu.MemorySpace.VMEM)
    weight_bytes = 2 * D * D * c_sz + 2 * D * 4       # two (D,D) weights + two biases

    # ---- Pass 1: K/V projections -> bf16 K_proj/V_proj (B, S, D) ----
    block_s = block_k
    proj_vmem = _vmem_limit_bytes(
        pipelined_bytes=4 * block_s * D * c_sz,        # k,v in + kp,vp out blocks
        resident_bytes=weight_bytes,
        scratch_bytes=0)
    kv_blk_spec = pl.BlockSpec((1, block_s, D), lambda b, s: (b, s, 0))
    k_proj, v_proj = pl.pallas_call(
        _kv_proj_kernel,
        out_shape=(jax.ShapeDtypeStruct((B, S, D), compute_dtype),
                   jax.ShapeDtypeStruct((B, S, D), compute_dtype)),
        grid_spec=pltpu.PrefetchScalarGridSpec(
            num_scalar_prefetch=0,
            grid=(B, S // block_s),
            in_specs=[kv_blk_spec, kv_blk_spec,
                      resident, resident,              # key_fc  (W^T, b)
                      resident, resident],             # value_fc(W^T, b)
            out_specs=(kv_blk_spec, kv_blk_spec)),
        compiler_params=pltpu.CompilerParams(
            dimension_semantics=("parallel", "parallel"),
            vmem_limit_bytes=proj_vmem),
    )(k_c, v_c, wk_t, bk, wv_t, bv)

    # ---- Pass 2: flash attention + output projection ----
    attn_vmem = _vmem_limit_bytes(
        pipelined_bytes=(block_q * D * c_sz            # q block
                         + 2 * block_k * D * c_sz      # k_proj, v_proj blocks
                         + block_q * D * o_sz),        # out block
        resident_bytes=weight_bytes,                   # wq, wo (+biases)
        scratch_bytes=(block_q * D * c_sz              # q_proj
                       + block_q * D * 4               # acc (f32)
                       + 2 * nhead * block_q * 4))     # m, l
    kernel = functools.partial(_flash_attn_kernel, nhead=nhead, head_dim=head_dim,
                               compute_dtype=compute_dtype)
    out = pl.pallas_call(
        kernel,
        out_shape=jax.ShapeDtypeStruct((B, S, D), query.dtype),
        grid_spec=pltpu.PrefetchScalarGridSpec(
            num_scalar_prefetch=0,
            grid=(B, num_q_blocks, num_kv_blocks),
            in_specs=[pl.BlockSpec((1, block_q, D), lambda b, qi, ki: (b, qi, 0)),
                      pl.BlockSpec((1, block_k, D), lambda b, qi, ki: (b, ki, 0)),
                      pl.BlockSpec((1, block_k, D), lambda b, qi, ki: (b, ki, 0)),
                      resident, resident,              # query_fc (W^T*scale, b*scale)
                      resident, resident],             # fc (output W^T, b)
            out_specs=pl.BlockSpec((1, block_q, D), lambda b, qi, ki: (b, qi, 0)),
            scratch_shapes=[pltpu.VMEM((block_q, D), compute_dtype),      # Q proj
                            pltpu.VMEM((nhead, block_q, 1), jnp.float32), # running m
                            pltpu.VMEM((nhead, block_q, 1), jnp.float32), # running l
                            pltpu.VMEM((block_q, D), jnp.float32)]),      # acc (heads in lane slabs)
        compiler_params=pltpu.CompilerParams(
            dimension_semantics=("parallel", "parallel", "arbitrary"),
            vmem_limit_bytes=attn_vmem),
    )(q_c, k_proj, v_proj, wq_t, bq, wo_t, bo)
    return out


# -----------------------------------------------------------------------------
# Pure-JAX reference mirroring the PyTorch forward (eval mode, mask=None).
# -----------------------------------------------------------------------------
def _reference_mha(query, key, value, params, *, nhead):
    B, S, D = query.shape
    hd = D // nhead

    def lin(x, w, b):
        return x @ w.T + b

    q = lin(query, params["wq"], params["bq"]).reshape(B, S, nhead, hd).transpose(0, 2, 1, 3)
    k = lin(key, params["wk"], params["bk"]).reshape(B, S, nhead, hd).transpose(0, 2, 1, 3)
    v = lin(value, params["wv"], params["bv"]).reshape(B, S, nhead, hd).transpose(0, 2, 1, 3)
    scores = jnp.einsum("bhqd,bhkd->bhqk", q, k) / math.sqrt(hd)
    attn = jax.nn.softmax(scores, axis=-1)
    out = jnp.einsum("bhqk,bhkd->bhqd", attn, v)
    out = out.transpose(0, 2, 1, 3).reshape(B, S, D)
    return lin(out, params["wo"], params["bo"])


def _init_params(key, d_model):
    # nn.Linear default init: U(-1/sqrt(fan_in), 1/sqrt(fan_in)).
    bound = 1.0 / math.sqrt(d_model)
    ks = jax.random.split(key, 8)

    def u(k, shape):
        return jax.random.uniform(k, shape, jnp.float32, -bound, bound)

    return {
        "wq": u(ks[0], (d_model, d_model)), "bq": u(ks[1], (1, d_model)),
        "wk": u(ks[2], (d_model, d_model)), "bk": u(ks[3], (1, d_model)),
        "wv": u(ks[4], (d_model, d_model)), "bv": u(ks[5], (1, d_model)),
        "wo": u(ks[6], (d_model, d_model)), "bo": u(ks[7], (1, d_model)),
    }


if __name__ == "__main__":
    # Lane-dense small shapes: D and head_dim multiples of 128, S multiple of the
    # block sizes -> unmasked vector stores and aligned per-head lane slabs.
    B, S, D, NHEAD = 2, 256, 256, 2

    root = jax.random.PRNGKey(0)
    k_param, k_q, k_k, k_v = jax.random.split(root, 4)

    params = _init_params(k_param, D)
    query = jax.random.normal(k_q, (B, S, D), jnp.float32)
    key_in = jax.random.normal(k_k, (B, S, D), jnp.float32)
    value = jax.random.normal(k_v, (B, S, D), jnp.float32)

    ref = _reference_mha(query, key_in, value, params, nhead=NHEAD)

    # Production path: bf16 MXU operands, f32 accumulation.
    out_bf16 = multi_head_attention(query, key_in, value, params,
                                    nhead=NHEAD, compute_dtype=jnp.bfloat16)
    out_bf16 = jax.block_until_ready(out_bf16)
    assert out_bf16.shape == (B, S, D)
    assert jnp.allclose(out_bf16, ref, atol=2.5e-2, rtol=2.5e-2), \
        "bf16-compute kernel mismatch vs JAX reference"

    # Structural sanity check in full f32 (only approx-reciprocal / op-order drift).
    out_f32 = multi_head_attention(query, key_in, value, params,
                                   nhead=NHEAD, compute_dtype=jnp.float32)
    out_f32 = jax.block_until_ready(out_f32)
    assert jnp.allclose(out_f32, ref, atol=5e-3, rtol=5e-3), \
        "f32-compute kernel mismatch vs JAX reference"

    print("KERNEL_OK")
</pallas_src>

<mosaic_0001>
module attributes {stable_mosaic.version = 11 : i64} {
  func.func @_kv_proj_kernel(%arg0: i32, %arg1: i32, %arg2: memref<1x128x256xbf16, #tpu.memory_space<vmem>>, %arg3: memref<1x128x256xbf16, #tpu.memory_space<vmem>>, %arg4: memref<256x256xbf16, #tpu.memory_space<vmem>>, %arg5: memref<1x256xf32, #tpu.memory_space<vmem>>, %arg6: memref<256x256xbf16, #tpu.memory_space<vmem>>, %arg7: memref<1x256xf32, #tpu.memory_space<vmem>>, %arg8: memref<1x128x256xbf16, #tpu.memory_space<vmem>>, %arg9: memref<1x128x256xbf16, #tpu.memory_space<vmem>>) attributes {dimension_semantics = [#tpu.dimension_semantics<parallel>, #tpu.dimension_semantics<parallel>], iteration_bounds = array<i64: 2, 2>, scalar_prefetch = 0 : i64, scratch_operands = 0 : i64, tpu.core_type = #tpu.core_type<tc>, window_params = [{transform_indices = @transform_0, window_bounds = array<i64: 1, 128, 256>}, {transform_indices = @transform_1, window_bounds = array<i64: 1, 128, 256>}, {pipeline_mode = #tpu.pipeline_mode<synchronous>, transform_indices = @transform_2, window_bounds = array<i64: 256, 256>}, {pipeline_mode = #tpu.pipeline_mode<synchronous>, transform_indices = @transform_3, window_bounds = array<i64: 1, 256>}, {pipeline_mode = #tpu.pipeline_mode<synchronous>, transform_indices = @transform_4, window_bounds = array<i64: 256, 256>}, {pipeline_mode = #tpu.pipeline_mode<synchronous>, transform_indices = @transform_5, window_bounds = array<i64: 1, 256>}, {transform_indices = @transform_6, window_bounds = array<i64: 1, 128, 256>}, {transform_indices = @transform_7, window_bounds = array<i64: 1, 128, 256>}]} {
    %c0 = arith.constant 0 : index
    %c0_0 = arith.constant 0 : index
    %c0_1 = arith.constant 0 : index
    %0 = vector.load %arg2[%c0, %c0_0, %c0_1] : memref<1x128x256xbf16, #tpu.memory_space<vmem>>, vector<1x128x256xbf16>
    %1 = vector.shape_cast %0 : vector<1x128x256xbf16> to vector<128x256xbf16>
    %c0_2 = arith.constant 0 : index
    %c0_3 = arith.constant 0 : index
    %2 = vector.load %arg4[%c0_2, %c0_3] : memref<256x256xbf16, #tpu.memory_space<vmem>>, vector<256x256xbf16>
    %cst = arith.constant dense<0.000000e+00> : vector<128x256xf32>
    %3 = tpu.matmul %1, %2, %cst {dimension_numbers = #tpu.dot_dimension_numbers<[1], [0], [0], [1], [0, 0, 1, 1], [], []>} : vector<128x256xbf16>, vector<256x256xbf16>, vector<128x256xf32> -> vector<128x256xf32>
    %c0_4 = arith.constant 0 : index
    %c0_5 = arith.constant 0 : index
    %4 = vector.load %arg5[%c0_4, %c0_5] : memref<1x256xf32, #tpu.memory_space<vmem>>, vector<1x256xf32>
    %5 = vector.broadcast %4 : vector<1x256xf32> to vector<128x256xf32>
    %6 = arith.addf %3, %5 : vector<128x256xf32>
    %7 = arith.truncf %6 : vector<128x256xf32> to vector<128x256xbf16>
    %c0_6 = arith.constant 0 : index
    %c0_7 = arith.constant 0 : index
    %c0_8 = arith.constant 0 : index
    %8 = vector.load %arg8[%c0_6, %c0_7, %c0_8] : memref<1x128x256xbf16, #tpu.memory_space<vmem>>, vector<1x128x256xbf16>
    %9 = vector.shape_cast %8 : vector<1x128x256xbf16> to vector<128x256xbf16>
    %10 = vector.shape_cast %7 : vector<128x256xbf16> to vector<1x128x256xbf16>
    tpu.vector_store %arg8[%c0_6, %c0_7, %c0_8], %10 {strides = array<i32>} : memref<1x128x256xbf16, #tpu.memory_space<vmem>>, vector<1x128x256xbf16>,
    %c0_9 = arith.constant 0 : index
    %c0_10 = arith.constant 0 : index
    %c0_11 = arith.constant 0 : index
    %11 = vector.load %arg3[%c0_9, %c0_10, %c0_11] : memref<1x128x256xbf16, #tpu.memory_space<vmem>>, vector<1x128x256xbf16>
    %12 = vector.shape_cast %11 : vector<1x128x256xbf16> to vector<128x256xbf16>
    %c0_12 = arith.constant 0 : index
    %c0_13 = arith.constant 0 : index
    %13 = vector.load %arg6[%c0_12, %c0_13] : memref<256x256xbf16, #tpu.memory_space<vmem>>, vector<256x256xbf16>
    %cst_14 = arith.constant dense<0.000000e+00> : vector<128x256xf32>
    %14 = tpu.matmul %12, %13, %cst_14 {dimension_numbers = #tpu.dot_dimension_numbers<[1], [0], [0], [1], [0, 0, 1, 1], [], []>} : vector<128x256xbf16>, vector<256x256xbf16>, vector<128x256xf32> -> vector<128x256xf32>
    %c0_15 = arith.constant 0 : index
    %c0_16 = arith.constant 0 : index
    %15 = vector.load %arg7[%c0_15, %c0_16] : memref<1x256xf32, #tpu.memory_space<vmem>>, vector<1x256xf32>
    %16 = vector.broadcast %15 : vector<1x256xf32> to vector<128x256xf32>
    %17 = arith.addf %14, %16 : vector<128x256xf32>
    %18 = arith.truncf %17 : vector<128x256xf32> to vector<128x256xbf16>
    %c0_17 = arith.constant 0 : index
    %c0_18 = arith.constant 0 : index
    %c0_19 = arith.constant 0 : index
    %19 = vector.load %arg9[%c0_17, %c0_18, %c0_19] : memref<1x128x256xbf16, #tpu.memory_space<vmem>>, vector<1x128x256xbf16>
    %20 = vector.shape_cast %19 : vector<1x128x256xbf16> to vector<128x256xbf16>
    %21 = vector.shape_cast %18 : vector<128x256xbf16> to vector<1x128x256xbf16>
    tpu.vector_store %arg9[%c0_17, %c0_18, %c0_19], %21 {strides = array<i32>} : memref<1x128x256xbf16, #tpu.memory_space<vmem>>, vector<1x128x256xbf16>,
    return
  }
  func.func @transform_0(%arg0: i32, %arg1: i32) -> (i32, i32, i32) {
    %c0_i32 = arith.constant 0 : i32
    %c0_i32_0 = arith.constant 0 : i32
    return %arg0, %arg1, %c0_i32 : i32, i32, i32
  }
  func.func @transform_1(%arg0: i32, %arg1: i32) -> (i32, i32, i32) {
    %c0_i32 = arith.constant 0 : i32
    %c0_i32_0 = arith.constant 0 : i32
    return %arg0, %arg1, %c0_i32 : i32, i32, i32
  }
  func.func @transform_2(%arg0: i32, %arg1: i32) -> (i32, i32) {
    %c0_i32 = arith.constant 0 : i32
    %c0_i32_0 = arith.constant 0 : i32
    %c0_i32_1 = arith.constant 0 : i32
    return %c0_i32, %c0_i32_0 : i32, i32
  }
  func.func @transform_3(%arg0: i32, %arg1: i32) -> (i32, i32) {
    %c0_i32 = arith.constant 0 : i32
    %c0_i32_0 = arith.constant 0 : i32
    %c0_i32_1 = arith.constant 0 : i32
    return %c0_i32, %c0_i32_0 : i32, i32
  }
  func.func @transform_4(%arg0: i32, %arg1: i32) -> (i32, i32) {
    %c0_i32 = arith.constant 0 : i32
    %c0_i32_0 = arith.constant 0 : i32
    %c0_i32_1 = arith.constant 0 : i32
    return %c0_i32, %c0_i32_0 : i32, i32
  }
  func.func @transform_5(%arg0: i32, %arg1: i32) -> (i32, i32) {
    %c0_i32 = arith.constant 0 : i32
    %c0_i32_0 = arith.constant 0 : i32
    %c0_i32_1 = arith.constant 0 : i32
    return %c0_i32, %c0_i32_0 : i32, i32
  }
  func.func @transform_6(%arg0: i32, %arg1: i32) -> (i32, i32, i32) {
    %c0_i32 = arith.constant 0 : i32
    %c0_i32_0 = arith.constant 0 : i32
    return %arg0, %arg1, %c0_i32 : i32, i32, i32
  }
  func.func @transform_7(%arg0: i32, %arg1: i32) -> (i32, i32, i32) {
    %c0_i32 = arith.constant 0 : i32
    %c0_i32_0 = arith.constant 0 : i32
    return %arg0, %arg1, %c0_i32 : i32, i32, i32
  }
}

</mosaic_0001>

<bundles_post_ra>
// kernel: tpu_custom_call.1
= control target key start
LH: loop header
LB: loop body
LE: loop exit
PB: predicated region body
PF: predicated region fallthrough
CT: control target
= control target key end

     0   :  { %s2962_s0 = inlined_call_operand.hbm [shape: bf16[2,256,256], index: 0, kind: input, shape index: {}]   ;;  %s2963_s1 = inlined_call_operand.hbm [shape: bf16[2,256,256], index: 1, kind: input, shape index: {}]   ;;  %s2964_s2 = inlined_call_operand.hbm [shape: bf16[256,256], index: 2, kind: input, shape index: {}]   ;;  %s2965_s3 = inlined_call_operand.vmem [shape: f32[1,256], index: 3, kind: input, shape index: {}]   ;;  %s2966_s4 = inlined_call_operand.hbm [shape: bf16[256,256], index: 4, kind: input, shape index: {}]   ;;  %s2967_s5 = inlined_call_operand.vmem [shape: f32[1,256], index: 5, kind: input, shape index: {}]   ;;  %s2968_s6 = inlined_call_operand.hbm [shape: bf16[2,256,256], index: 6, kind: output, shape index: {0}]   ;;  %s2969_s7 = inlined_call_operand.hbm [shape: bf16[2,256,256], index: 7, kind: output, shape index: {1}]  }
   0x1   :  { %2984 = sst [smem:[#allocation24_spill]] %s2964_s2 }
   0x2   :  { %2985 = sst [smem:[#allocation25_spill]] %s2966_s4 }
   0x3   :  { %2986 = sst [smem:[#allocation26_spill]] %s2968_s6 }
   0x4   :  { %2987 = sst [smem:[#allocation27_spill]] %s2969_s7 }
   0x5   :  { %13 = vsyncpa [#allocation3], 0 }
   0x6   :  { %15 = vsyncpa [#allocation3 + $0x1], 0 }
   0x7   :  { %16 = vsyncpa [#allocation6], 0 }
   0x8   :  { %18 = vsyncpa [#allocation6 + $0x1], 0 }
   0x9   :  { %19 = vsyncpa [#allocation9], 0 }
   0xa   :  { %20 = vsyncpa [#allocation4], 0 }
   0xb   :  { %22 = vsyncpa [#allocation4 + $0x1], 0 }
   0xc   :  { %23 = vsyncpa [#allocation12], 0 }
   0xd   :  { %25 = vsyncpa [#allocation12 + $0x1], 0  ;;  %s2434_s24 = smov 0   ;;  %s2436_s25 = smov 0  }
   0xe   :  { %s2438_s26 = smov 0   ;;  %s2440_s27 = smov 0  }
   0xf   :  { %s2442_s28 = smov 0   ;;  %s2444_s29 = smov 0  }
  0x10   :  { %s2446_s30 = smov 0   ;;  %s2448_s8 = smov 0  }
  0x11 LB: > { %2988 = sst [smem:[#allocation19_spill]] %s2354_s24  ;;  %s2475_s9 = sadd.s32 4294967295, %s2382_s8   ;;  %s2382_s8 = sphi %s2448_s8, %s31_s8   ;;  %s2378_s30 = sphi %s2446_s30, %s3025_s30   ;;  %s2374_s29 = sphi %s2444_s29, %s3024_s29   ;;  %s2370_s28 = sphi %s2442_s28, %s3023_s28   ;;  %s2366_s27 = sphi %s2440_s27, %s3022_s27   ;;  %s2362_s26 = sphi %s2438_s26, %s3021_s26   ;;  %s2358_s25 = sphi %s2436_s25, %s3020_s25   ;;  %s2354_s24 = sphi %s2434_s24, %s3019_s24  }
  0x12   : > { %2989 = sst [smem:[#allocation20_spill]] %s2370_s28  ;;  %s1669_s10 = sadd.s32 4294967294, %s2382_s8  }
  0x13   : > { %p65_p0 = scmp.ne.s32.totalorder %s2358_s25, %s2354_s24  ;;  %p2970_p1 = scmp.eq.s32.totalorder %s2475_s9, 0 }
  0x14   : > { %p209_p3 = scmp.eq.s32.totalorder %s1669_s10, 3  ;;  %p1670_p5 = scmp.ge.s32.totalorder %s2382_s8, 1 }
  0x15   : > { %p2484_p4 = por %p2970_p1, %p65_p0  ;;  %p244_p7 = scmp.lt.s32.totalorder %s2382_s8, 5 }
  0x16   : > { %p2489_p6 = por %p209_p3, %p65_p0  ;;  %s2384_s14 = smov [#allocation7]  }
  0x17   : > { %s2990_s11 = scalar_select %p2484_p4, 1, 0 }
  0x18   : > { %s2991_s12 = scalar_select %p2489_p6, 1, 0 }
  0x19   : > { %p2494_p8 = pnand %p1670_p5, %p244_p7  ;;  %s256_s15 = sshll.u32 %s2384_s14, 4  ;;  %s257_s15 = int_to_ptr.vmem [resolvable:$true] %s256_s15 }
  0x1a   : > { %2992 = sst [smem:[#allocation21_spill]] %s2991_s12  ;;  %s2385_s17 = smov [#allocation8]  }
  0x1b   : > { %s2993_s13 = scalar_select %p2494_p8, 1, 0 }
  0x1c   : > { %p1883_p9 = pneg %p2494_p8  ;;  %s272_s18 = sshll.u32 %s2385_s17, 4  ;;  %s2506_s18 = int_to_ptr.vmem [resolvable:$true] %s272_s18 }
  0x1d   : > { %s2995_s2 = sld [smem:[#allocation24_spill]] }
  0x1e   : > { %p2502_p10 = pnand %p1883_p9, %p2970_p1 }
  0x20   : > { %p2126_p12 = pneg %p2502_p10 }
  0x23   : > { %s2124_s21 = scalar_lea.hbm %s2995_s2, 4096 }
  0x24   : > { %p2125_p11 = scmp.ne.s32.totalorder %s2995_s2, %s2124_s21  ;;  %p2131_p3 = scmp.lt.u32.totalorder %s2124_s21, %s2995_s2 }
  0x26   : > { %p2127_p13 = pnand %p2126_p12, %p2125_p11 }
  0x28   : > { %p2128_p0 = pneg %p2127_p13 }
  0x2a   : > { %p2133_p5 = pnand %p2131_p3, %p2128_p0 }
  0x2c   : > { %2136 = shalt.err (!%p2133_p5)
}
  0x2d   : > { %s2137_s17 = scalar_lea.vmem %s257_s15, 4096  ;;  %p2145_p2 = scmp.lt.s32.totalorder %s257_s15, %s257_s15 }
  0x2e   : > { %p2138_p7 = scmp.ne.s32.totalorder %s257_s15, %s2137_s17  ;;  %p2146_p6 = scmp.lt.s32.totalorder %s2137_s17, %s2137_s17 }
  0x30   : > { %p2140_p9 = pnand %p2138_p7, %p2126_p12  ;;  %p2147_p4 = por %p2146_p6, %p2145_p2 }
  0x32   : > { %p2141_p1 = pneg %p2140_p9 }
  0x34   : > { %p2148_p8 = pnand %p2147_p4, %p2141_p1 }
  0x36   : > { %2151 = shalt.err (!%p2148_p8)
}
  0x37   : > { %s2976_s19 = smov 128   ;;  %s2978_s20 = smov 8  }
  0x38   : > { %1886 = dma.hbm_to_vmem [thread:$0]  (!%p2502_p10), %s2995_s2, 4096, %s257_s15, [#allocation6], %s2976_s19, %s2976_s19, %s2978_s20  }
  0x39   : > { %s2996_s4 = sld [smem:[#allocation25_spill]] }
  0x3f   : > { %s2152_s14 = scalar_lea.hbm %s2996_s4, 4096 }
  0x40   : > { %p2153_p1 = scmp.ne.s32.totalorder %s2996_s4, %s2152_s14  ;;  %p2159_p6 = scmp.lt.u32.totalorder %s2152_s14, %s2996_s4 }
  0x42   : > { %p2155_p2 = pnand %p2153_p1, %p2126_p12 }
  0x44   : > { %p2156_p4 = pneg %p2155_p2 }
  0x46   : > { %p2161_p8 = pnand %p2159_p6, %p2156_p4 }
  0x48   : > { %2164 = shalt.err (!%p2161_p8)
}
  0x49   : > { %s2165_s15 = scalar_lea.vmem %s2506_s18, 4096  ;;  %p2173_p3 = scmp.lt.s32.totalorder %s2506_s18, %s2506_s18 }
  0x4a   : > { %p2166_p11 = scmp.ne.s32.totalorder %s2506_s18, %s2165_s15  ;;  %p2174_p5 = scmp.lt.s32.totalorder %s2165_s15, %s2165_s15 }
  0x4c   : > { %p2168_p13 = pnand %p2166_p11, %p2126_p12  ;;  %p2175_p7 = por %p2174_p5, %p2173_p3 }
  0x4e   : > { %p2169_p0 = pneg %p2168_p13 }
  0x50   : > { %p2176_p9 = pnand %p2175_p7, %p2169_p0 }
  0x52   : > { %2179 = shalt.err (!%p2176_p9)
}
  0x53   : > { %1889 = dma.hbm_to_vmem [thread:$0]  (!%p2502_p10), %s2996_s4, 4096, %s2506_s18, [#allocation9], %s2976_s19, %s2976_s19, %s2978_s20  }
  0x54   : > { %s40_s12 = sadd.s32 1, %s2374_s29  ;;  %s43_s16 = sadd.s32 1, %s2378_s30 }
  0x55   : > { %p41_p12 = scmp.ge.s32.totalorder %s40_s12, 2  ;;  %s52_s21 = sadd.s32 1, %s2362_s26 }
  0x56   : > { %p59_p1 = scmp.ne.s32.totalorder %s2362_s26, %s2358_s25  ;;  %p60_p2 = scmp.eq.s32.totalorder %s2382_s8, 0 }
  0x57   : > { %s3027_s12 = smov (%p41_p12, %s40_s12), 0  ;;  %s3029_s16 = smov (!%p41_p12, %s43_s16), %s2378_s30 }
  0x58   : > { %2997 = sst [smem:[#allocation22_spill]] %s3027_s12  ;;  %s48_s22 = ssub.s32 %s2374_s29, %s3027_s12 }
  0x59   : > { %p2572_p4 = por %p60_p2, %p59_p1  ;;  %p45_p10 = scmp.ge.s32.totalorder %s3029_s16, 2 }
  0x5a   : > { %p2999_p6 = scmp.eq.s32.totalorder %s2475_s9, 3  ;;  %p1906_p11 = scmp.lt.s32.totalorder %s2382_s8, 4 }
  0x5b   : > { %s289_s10 = sand.u32 1, %s2362_s26   ;;  %s3031_s16 = smov (%p45_p10, %s3029_s16), 0 }
  0x5c   : > { %p2578_p8 = por %p2999_p6, %p59_p1  ;;  %s1674_s14 = sshll.u32 %s289_s10, 7 }
  0x5d   : > { %s47_s17 = ssub.s32 %s2378_s30, %s3031_s16  ;;  %s1831_s7 = sshll.u32 %s2374_s29, 5 }
  0x5e   : > { %s3000_s18 = scalar_select %p2578_p8, 1, 0 }
  0x5f   : > { %s49_s15 = sor.u32 %s48_s22, %s47_s17  ;;  %s1677_s24 = sshll.u32 %s2378_s30, 6 }
  0x60   : > { %3001 = sst [smem:[#allocation23_spill]] %s3000_s18  ;;  %p50_p13 = scmp.eq.s32.totalorder %s49_s15, 0 }
  0x61   : > { %s300_s19 = sadd.s32 %s1831_s7, %s1677_s24  ;;  %s293_s20 = scalar_lea.vmem [#allocation2], %s1674_s14 }
  0x62   : > { %s303_s2 = sshll.u32 %s293_s20, 4  ;;  %s1678_s12 = sshll.u32 %s300_s19, 6  ;;  %s2593_s2 = int_to_ptr.vmem [resolvable:$true] %s303_s2 }
  0x63   : > { %s2591_s4 = scalar_select %p50_p13, %s2362_s26, %s52_s21  }
  0x64   : > { %s2598_s28 = scalar_lea.hbm %s2962_s0, %s1678_s12  ;;  %p2604_p0 = pnand %p1906_p11, %p2572_p4 }
  0x65   : > { %s2611_s19 = scalar_lea.hbm %s2963_s1, %s1678_s12  ;;  %s317_s6 = scalar_lea.vmem [#allocation5], %s1674_s14 }
  0x66   : > { %s2613_s18 = sshll.u32 %s317_s6, 4  ;;  %s2615_s23 = scalar_lea.sflag [#allocation3], %s289_s10  ;;  %s2647_s18 = int_to_ptr.vmem [resolvable:$true] %s2613_s18 }
  0x67   : > { %s2180_s17 = scalar_lea.hbm %s2598_s28, 2048  ;;  %p2182_p5 = pneg %p2604_p0 }
  0x68   : > { %p2181_p3 = scmp.ne.s32.totalorder %s2598_s28, %s2180_s17  ;;  %s2185_s24 = scalar_lea.hbm %s2962_s0, 8192 }
  0x69   : > { %p2186_p12 = scmp.lt.u32.totalorder %s2598_s28, %s2962_s0  ;;  %p2187_p1 = scmp.lt.u32.totalorder %s2185_s24, %s2180_s17 }
  0x6a   : > { %p2183_p7 = pnand %p2182_p5, %p2181_p3  ;;  %p2189_p4 = scmp.lt.u32.totalorder %s2180_s17, %s2598_s28 }
  0x6b   : > { %p2188_p2 = por %p2187_p1, %p2186_p12 }
  0x6c   : > { %p2184_p9 = pneg %p2183_p7 }
  0x6d   : > { %p2190_p10 = por %p2189_p4, %p2188_p2 }
  0x6f   : > { %p2191_p6 = pnand %p2190_p10, %p2184_p9 }
  0x71   : > { %2194 = shalt.err (!%p2191_p6)
}
  0x72   : > { %s2195_s10 = scalar_lea.vmem %s2593_s2, 2048  ;;  %s2388_s14 = smov [#allocation2]  }
  0x73   : > { %p2196_p11 = scmp.ne.s32.totalorder %s2593_s2, %s2195_s10  ;;  %s2200_s21 = sshll.u32 %s2388_s14, 4  ;;  %s2201_s21 = int_to_ptr.vmem [resolvable:$false] %s2200_s21 }
  0x74   : > { %s2202_s6 = scalar_lea.vmem %s2201_s21, 4096  ;;  %p2203_p7 = scmp.lt.s32.totalorder %s2593_s2, %s2201_s21 }
  0x75   : > { %p2198_p13 = pnand %p2196_p11, %p2182_p5  ;;  %p2204_p12 = scmp.lt.s32.totalorder %s2202_s6, %s2195_s10 }
  0x77   : > { %p2199_p3 = pneg %p2198_p13  ;;  %p2205_p1 = por %p2204_p12, %p2203_p7 }
  0x79   : > { %p2206_p2 = pnand %p2205_p1, %p2199_p3 }
  0x7b   : > { %2209 = shalt.err (!%p2206_p2)
}
  0x7c   : > { %s3003_s17 = smov 8   ;;  %s3004_s15 = smov 128  }
  0x7d   : > { %1893 = dma.hbm_to_vmem [thread:$0]  (!%p2604_p0), %s2598_s28, 2048, %s2593_s2, %s2615_s23, %s3004_s15, %s3004_s15, %s3003_s17  }
  0x7e   : > { %s313_s7 = sand.u32 1, %s2382_s8   ;;  %s2210_s20 = scalar_lea.hbm %s2611_s19, 2048 }
  0x7f   : > { %s2650_s24 = scalar_lea.sflag [#allocation6], %s313_s7  ;;  %p2211_p9 = scmp.ne.s32.totalorder %s2611_s19, %s2210_s20 }
  0x80   : > { %s2215_s14 = scalar_lea.hbm %s2963_s1, 8192  ;;  %p2216_p6 = scmp.lt.u32.totalorder %s2611_s19, %s2963_s1 }
  0x81   : > { %p2213_p4 = pnand %p2211_p9, %p2182_p5  ;;  %p2217_p11 = scmp.lt.u32.totalorder %s2215_s14, %s2210_s20 }
  0x82   : > { %p2219_p3 = scmp.lt.u32.totalorder %s2210_s20, %s2611_s19 }
  0x83   : > { %p2214_p10 = pneg %p2213_p4  ;;  %p2218_p13 = por %p2217_p11, %p2216_p6 }
  0x85   : > { %p2220_p7 = por %p2219_p3, %p2218_p13 }
  0x87   : > { %p2221_p12 = pnand %p2220_p7, %p2214_p10 }
  0x89   : > { %2224 = shalt.err (!%p2221_p12)
}
  0x8a   : > { %s2225_s2 = scalar_lea.vmem %s2647_s18, 2048  ;;  %s2389_s28 = smov [#allocation5]  }
  0x8b   : > { %p2226_p1 = scmp.ne.s32.totalorder %s2647_s18, %s2225_s2  ;;  %s2230_s23 = sshll.u32 %s2389_s28, 4  ;;  %s2231_s23 = int_to_ptr.vmem [resolvable:$false] %s2230_s23 }
  0x8c   : > { %s2232_s7 = scalar_lea.vmem %s2231_s23, 4096  ;;  %p2233_p4 = scmp.lt.s32.totalorder %s2647_s18, %s2231_s23 }
  0x8d   : > { %p2228_p2 = pnand %p2226_p1, %p2182_p5  ;;  %p2234_p6 = scmp.lt.s32.totalorder %s2232_s7, %s2225_s2 }
  0x8f   : > { %p2229_p9 = pneg %p2228_p2  ;;  %p2235_p11 = por %p2234_p6, %p2233_p4 }
  0x91   : > { %p2236_p13 = pnand %p2235_p11, %p2229_p9 }
  0x93   : > { %2239 = shalt.err (!%p2236_p13)
}
  0x94   : > { %1896 = dma.hbm_to_vmem [thread:$0]  (!%p2604_p0), %s2611_s19, 2048, %s2647_s18, %s2650_s24, %s3004_s15, %s3004_s15, %s3003_s17  }
  0x95   : > { %p3005_p5 = scmp.ne.s32.totalorder %s2993_s13, 0 }
  0x96   : > { %s2682_s20 = sand.u32 (!%p3005_p5), 1, %s2358_s25   ;;  %p3006_p10 = scmp.ne.s32.totalorder (!%p3005_p5), %s2990_s11, 0 }
  0x97   : > { %339 = sbr.rel (%p3005_p5) target bundleno = 547 (0x223), region = 44  ;;  %s2685_s12 = sshll.u32 (!%p3005_p5), %s2682_s20, 7 }
  0x98   : > { %s342_s22 = scalar_lea.sflag (!%p3005_p5), [#allocation3], %s2682_s20  ;;  %s2689_s10 = scalar_lea.vmem (!%p3005_p5), [#allocation2], %s2685_s12 }
  0x9e   : > { %2329 = dma.done.wait (%p3006_p10), %s342_s22, 2048  }
  0x9f   : > { %2331 = vsyncadd (%p3006_p10), %s342_s22, 4294965248  ;;  %s350_s13 = sand.u32 1, %s2475_s9   ;;  %s2697_s18 = scalar_lea.vmem [#allocation5], %s2685_s12 }
  0xa0   : > { %s351_s19 = scalar_lea.sflag [#allocation6], %s350_s13 }
  0xa1   : > { %2333 = dma.done.wait (%p3006_p10), %s351_s19, 2048  }
  0xa2   : > { %2335 = vsyncadd (%p3006_p10), %s351_s19, 4294965248  ;;  %p3007_p0 = scmp.eq.s32.totalorder %s2475_s9, 0 }
  0xa4   : > { %2337 = dma.done.wait (%p3007_p0), [#allocation6], 4096   ;;  %p3008_p3 = pmov %p3007_p0 }
  0xa5   : > { %p3009_p7 = pmov %p3007_p0 }
  0xa6   : > { %2339 = vsyncadd (%p3008_p3), [#allocation6], 4294963200 }
  0xa7   : > { %2341 = dma.done.wait (%p3009_p7), [#allocation9], 4096   ;;  %p3010_p12 = pmov %p3007_p0 }
  0xa8   : > { %v1980_v0 = vld [vmem:[#allocation7 + $0x4] ss:$8 sps:$4 sm:$0xff]   ;;  %v1984_v2 = vld [vmem:[#allocation7] ss:$8 sps:$4 sm:$0xff]   ;;  %v1986_v4 = vld [vmem:[#allocation7 + $0x14] ss:$8 sps:$4 sm:$0xff]  }
  0xa9   : > { %2343 = vsyncadd (%p3010_p12), [#allocation9], 4294963200  ;;  %v1982_v1 = vld [vmem:[#allocation8 + $0x4] ss:$8 sps:$4 sm:$0xff]   ;;  %707 = vmatprep.subr.bf16.mxu0 %v1980_v0  ;;  %v1985_v3 = vld [vmem:[#allocation8] ss:$8 sps:$4 sm:$0xff]  }
  0xaa   : > { %1232 = vmatprep.subr.bf16.mxu1 %v1982_v1  ;;  %708 = vmatpush1.bf16.msra.mxu0 %v1984_v2  ;;  %v1988_v5 = vld [vmem:[#allocation8 + $0x14] ss:$8 sps:$4 sm:$0xff]   ;;  %v1990_v6 = vld [vmem:[#allocation7 + $0x10] ss:$8 sps:$4 sm:$0xff]   ;;  %v1992_v8 = vld [vmem:[#allocation7 + $0x24] ss:$8 sps:$4 sm:$0xff]  }
  0xab   : > { %1233 = vmatpush1.bf16.msra.mxu1 %v1985_v3  ;;  %709 = vmatprep.subr.bf16.mxu0 %v1986_v4  ;;  %v1991_v7 = vld [vmem:[#allocation8 + $0x10] ss:$8 sps:$4 sm:$0xff]   ;;  %v1994_v9 = vld [vmem:[#allocation8 + $0x24] ss:$8 sps:$4 sm:$0xff]   ;;  %v1996_v10 = vld [vmem:[#allocation7 + $0x20] ss:$8 sps:$4 sm:$0xff]  }
  0xac   : > { %1234 = vmatprep.subr.bf16.mxu1 %v1988_v5  ;;  %v1997_v11 = vld [vmem:[#allocation8 + $0x20] ss:$8 sps:$4 sm:$0xff]   ;;  %v1998_v12 = vld [vmem:[#allocation7 + $0x34] ss:$8 sps:$4 sm:$0xff]   ;;  %v2002_v14 = vld [vmem:[#allocation7 + $0x30] ss:$8 sps:$4 sm:$0xff]  }
  0xad   : > { %v2000_v13 = vld [vmem:[#allocation8 + $0x34] ss:$8 sps:$4 sm:$0xff]   ;;  %v2003_v15 = vld [vmem:[#allocation8 + $0x30] ss:$8 sps:$4 sm:$0xff]   ;;  %v2004_v16 = vld [vmem:[#allocation7 + $0x44] ss:$8 sps:$4 sm:$0xff]  }
  0xae   : > { %710 = vmatpush1.bf16.msra.mxu0 %v1990_v6  ;;  %v2006_v17 = vld [vmem:[#allocation8 + $0x44] ss:$8 sps:$4 sm:$0xff]   ;;  %v2008_v18 = vld [vmem:[#allocation7 + $0x40] ss:$8 sps:$4 sm:$0xff]   ;;  %v2010_v20 = vld [vmem:[#allocation7 + $0x54] ss:$8 sps:$4 sm:$0xff]  }
  0xaf   : > { %1235 = vmatpush1.bf16.msra.mxu1 %v1991_v7  ;;  %711 = vmatprep.subr.bf16.mxu0 %v1992_v8  ;;  %v2009_v19 = vld [vmem:[#allocation8 + $0x40] ss:$8 sps:$4 sm:$0xff]   ;;  %v2012_v21 = vld [vmem:[#allocation8 + $0x54] ss:$8 sps:$4 sm:$0xff]   ;;  %v2014_v22 = vld [vmem:[#allocation7 + $0x50] ss:$8 sps:$4 sm:$0xff]  }
  0xb0   : > { %1236 = vmatprep.subr.bf16.mxu1 %v1994_v9  ;;  %v2015_v23 = vld [vmem:[#allocation8 + $0x50] ss:$8 sps:$4 sm:$0xff]   ;;  %v2016_v24 = vld [vmem:[#allocation7 + $0x64] ss:$8 sps:$4 sm:$0xff]   ;;  %v2020_v26 = vld [vmem:[#allocation7 + $0x60] ss:$8 sps:$4 sm:$0xff]  }
  0xb1   : > { %v2018_v25 = vld [vmem:[#allocation8 + $0x64] ss:$8 sps:$4 sm:$0xff]   ;;  %v2021_v27 = vld [vmem:[#allocation8 + $0x60] ss:$8 sps:$4 sm:$0xff]   ;;  %v2022_v28 = vld [vmem:[#allocation7 + $0x74] ss:$8 sps:$4 sm:$0xff]  }
  0xb2   : > { %712 = vmatpush1.bf16.msra.mxu0 %v1996_v10  ;;  %v2024_v29 = vld [vmem:[#allocation8 + $0x74] ss:$8 sps:$4 sm:$0xff]   ;;  %v2026_v30 = vld [vmem:[#allocation7 + $0x70] ss:$8 sps:$4 sm:$0xff]   ;;  %v2028_v32 = vld [vmem:[#allocation7 + $0x84] ss:$8 sps:$4 sm:$0xff]  }
  0xb3   : > { %1237 = vmatpush1.bf16.msra.mxu1 %v1997_v11  ;;  %713 = vmatprep.subr.bf16.mxu0 %v1998_v12  ;;  %v2027_v31 = vld [vmem:[#allocation8 + $0x70] ss:$8 sps:$4 sm:$0xff]   ;;  %v2030_v33 = vld [vmem:[#allocation8 + $0x84] ss:$8 sps:$4 sm:$0xff]   ;;  %v2032_v34 = vld [vmem:[#allocation7 + $0x80] ss:$8 sps:$4 sm:$0xff]  }
  0xb4   : > { %1238 = vmatprep.subr.bf16.mxu1 %v2000_v13  ;;  %v2033_v35 = vld [vmem:[#allocation8 + $0x80] ss:$8 sps:$4 sm:$0xff]   ;;  %v2034_v36 = vld [vmem:[#allocation7 + $0x94] ss:$8 sps:$4 sm:$0xff]   ;;  %v2038_v38 = vld [vmem:[#allocation7 + $0x90] ss:$8 sps:$4 sm:$0xff]  }
  0xb5   : > { %v2036_v37 = vld [vmem:[#allocation8 + $0x94] ss:$8 sps:$4 sm:$0xff]   ;;  %v2039_v39 = vld [vmem:[#allocation8 + $0x90] ss:$8 sps:$4 sm:$0xff]   ;;  %v2040_v40 = vld [vmem:[#allocation7 + $0xa4] ss:$8 sps:$4 sm:$0xff]  }
  0xb6   : > { %714 = vmatpush1.bf16.msra.mxu0 %v2002_v14  ;;  %v2042_v41 = vld [vmem:[#allocation8 + $0xa4] ss:$8 sps:$4 sm:$0xff]   ;;  %v2044_v42 = vld [vmem:[#allocation7 + $0xa0] ss:$8 sps:$4 sm:$0xff]   ;;  %v2046_v44 = vld [vmem:[#allocation7 + $0xb4] ss:$8 sps:$4 sm:$0xff]  }
  0xb7   : > { %1239 = vmatpush1.bf16.msra.mxu1 %v2003_v15  ;;  %715 = vmatprep.subr.bf16.mxu0 %v2004_v16  ;;  %v2045_v43 = vld [vmem:[#allocation8 + $0xa0] ss:$8 sps:$4 sm:$0xff]   ;;  %v2048_v45 = vld [vmem:[#allocation8 + $0xb4] ss:$8 sps:$4 sm:$0xff]   ;;  %v2050_v46 = vld [vmem:[#allocation7 + $0xb0] ss:$8 sps:$4 sm:$0xff]  }
  0xb8   : > { %1240 = vmatprep.subr.bf16.mxu1 %v2006_v17  ;;  %v2051_v47 = vld [vmem:[#allocation8 + $0xb0] ss:$8 sps:$4 sm:$0xff]   ;;  %v2052_v48 = vld [vmem:[#allocation7 + $0xc4] ss:$8 sps:$4 sm:$0xff]   ;;  %v2056_v52 = vld [vmem:[#allocation7 + $0xc0] ss:$8 sps:$4 sm:$0xff]  }
  0xb9   : > { %v2078_v49 = vld [vmem:[%s2689_s10 + $0x4] ss:$8 sps:$4 sm:$0xff]   ;;  %v2057_v53 = vld [vmem:[#allocation8 + $0xc0] ss:$8 sps:$4 sm:$0xff]   ;;  %v2058_v54 = vld [vmem:[#allocation7 + $0xd4] ss:$8 sps:$4 sm:$0xff]  }
  0xba   : > { %716 = vmatpush1.bf16.msra.mxu0 %v2008_v18  ;;  %v2054_v50 = vld [vmem:[#allocation8 + $0xc4] ss:$8 sps:$4 sm:$0xff]   ;;  %739 = vmatprep.mubr.bf16.mxu0 %v2078_v49  ;;  %v2060_v55 = vld [vmem:[#allocation8 + $0xd4] ss:$8 sps:$4 sm:$0xff]   ;;  %v2062_v56 = vld [vmem:[#allocation7 + $0xd0] ss:$8 sps:$4 sm:$0xff]  }
  0xbb   : > { %1241 = vmatpush1.bf16.msra.mxu1 %v2009_v19  ;;  %717 = vmatprep.subr.bf16.mxu0 %v2010_v20  ;;  %v2081_v51 = vld [vmem:[%s2697_s18 + $0x4] ss:$8 sps:$4 sm:$0xff]   ;;  %v2063_v57 = vld [vmem:[#allocation8 + $0xd0] ss:$8 sps:$4 sm:$0xff]   ;;  %v2068_v60 = vld [vmem:[#allocation7 + $0xe0] ss:$8 sps:$4 sm:$0xff]  }
  0xbc   : > { %1242 = vmatprep.subr.bf16.mxu1 %v2012_v21  ;;  %1264 = vmatprep.mubr.bf16.mxu1 %v2081_v51  ;;  %v2064_v58 = vld [vmem:[#allocation7 + $0xe4] ss:$8 sps:$4 sm:$0xff]   ;;  %v2069_v61 = vld [vmem:[#allocation8 + $0xe0] ss:$8 sps:$4 sm:$0xff]   ;;  %v2070_v62 = vld [vmem:[#allocation7 + $0xf4] ss:$8 sps:$4 sm:$0xff]  }
  0xbd   : > { %v2066_v59 = vld [vmem:[#allocation8 + $0xe4] ss:$8 sps:$4 sm:$0xff]   ;;  %v2072_v63 = vld [vmem:[#allocation8 + $0xf4] ss:$8 sps:$4 sm:$0xff]   ;;  %v2074_v0 = vld [vmem:[#allocation7 + $0xf0] ss:$8 sps:$4 sm:$0xff]  }
  0xbe   : > { %718 = vmatpush1.bf16.msra.mxu0 %v2014_v22  ;;  %v2075_v1 = vld [vmem:[#allocation8 + $0xf0] ss:$8 sps:$4 sm:$0xff]   ;;  %v2076_v2 = vld [vmem:[%s2689_s10] ss:$8 sps:$4 sm:$0xff]   ;;  %v2082_v4 = vld [vmem:[%s2689_s10 + $0x14] ss:$8 sps:$4 sm:$0xff]  }
  0xbf   : > { %1243 = vmatpush1.bf16.msra.mxu1 %v2015_v23  ;;  %719 = vmatprep.subr.bf16.mxu0 %v2016_v24  ;;  %v2079_v3 = vld [vmem:[%s2697_s18] ss:$8 sps:$4 sm:$0xff]   ;;  %v2084_v5 = vld [vmem:[%s2697_s18 + $0x14] ss:$8 sps:$4 sm:$0xff]   ;;  %v2086_v6 = vld [vmem:[%s2689_s10 + $0x10] ss:$8 sps:$4 sm:$0xff]  }
  0xc0   : > { %1244 = vmatprep.subr.bf16.mxu1 %v2018_v25  ;;  %v2087_v7 = vld [vmem:[%s2697_s18 + $0x10] ss:$8 sps:$4 sm:$0xff]   ;;  %v2088_v8 = vld [vmem:[%s2689_s10 + $0x24] ss:$8 sps:$4 sm:$0xff]   ;;  %v2092_v10 = vld [vmem:[%s2689_s10 + $0x20] ss:$8 sps:$4 sm:$0xff]  }
  0xc1   : > { %v2090_v9 = vld [vmem:[%s2697_s18 + $0x24] ss:$8 sps:$4 sm:$0xff]   ;;  %v2093_v11 = vld [vmem:[%s2697_s18 + $0x20] ss:$8 sps:$4 sm:$0xff]   ;;  %v2094_v12 = vld [vmem:[%s2689_s10 + $0x34] ss:$8 sps:$4 sm:$0xff]  }
  0xc2   : > { %720 = vmatpush1.bf16.msra.mxu0 %v2020_v26  ;;  %v2096_v13 = vld [vmem:[%s2697_s18 + $0x34] ss:$8 sps:$4 sm:$0xff]   ;;  %v2098_v14 = vld [vmem:[%s2689_s10 + $0x30] ss:$8 sps:$4 sm:$0xff]   ;;  %v2100_v16 = vld [vmem:[%s2689_s10 + $0x44] ss:$8 sps:$4 sm:$0xff]  }
  0xc3   : > { %1245 = vmatpush1.bf16.msra.mxu1 %v2021_v27  ;;  %721 = vmatprep.subr.bf16.mxu0 %v2022_v28  ;;  %v2099_v15 = vld [vmem:[%s2697_s18 + $0x30] ss:$8 sps:$4 sm:$0xff]   ;;  %v2102_v17 = vld [vmem:[%s2697_s18 + $0x44] ss:$8 sps:$4 sm:$0xff]   ;;  %v2104_v18 = vld [vmem:[%s2689_s10 + $0x40] ss:$8 sps:$4 sm:$0xff]  }
  0xc4   : > { %1246 = vmatprep.subr.bf16.mxu1 %v2024_v29  ;;  %v2105_v19 = vld [vmem:[%s2697_s18 + $0x40] ss:$8 sps:$4 sm:$0xff]   ;;  %v2106_v20 = vld [vmem:[%s2689_s10 + $0x54] ss:$8 sps:$4 sm:$0xff]   ;;  %v2110_v22 = vld [vmem:[%s2689_s10 + $0x50] ss:$8 sps:$4 sm:$0xff]  }
  0xc5   : > { %v2108_v21 = vld [vmem:[%s2697_s18 + $0x54] ss:$8 sps:$4 sm:$0xff]   ;;  %v2111_v23 = vld [vmem:[%s2697_s18 + $0x50] ss:$8 sps:$4 sm:$0xff]   ;;  %v2112_v24 = vld [vmem:[%s2689_s10 + $0x64] ss:$8 sps:$4 sm:$0xff]  }
  0xc6   : > { %722 = vmatpush1.bf16.msra.mxu0 %v2026_v30  ;;  %v2114_v25 = vld [vmem:[%s2697_s18 + $0x64] ss:$8 sps:$4 sm:$0xff]   ;;  %v2116_v26 = vld [vmem:[%s2689_s10 + $0x60] ss:$8 sps:$4 sm:$0xff]   ;;  %v2118_v28 = vld [vmem:[%s2689_s10 + $0x74] ss:$8 sps:$4 sm:$0xff]  }
  0xc7   : > { %1247 = vmatpush1.bf16.msra.mxu1 %v2027_v31  ;;  %723 = vmatprep.subr.bf16.mxu0 %v2028_v32  ;;  %v2117_v27 = vld [vmem:[%s2697_s18 + $0x60] ss:$8 sps:$4 sm:$0xff]   ;;  %v2120_v29 = vld [vmem:[%s2697_s18 + $0x74] ss:$8 sps:$4 sm:$0xff]   ;;  %v2122_v30 = vld [vmem:[%s2689_s10 + $0x70] ss:$8 sps:$4 sm:$0xff]   ;;  %v457_v32 = vlaneseq }
  0xc8   : > { %1248 = vmatprep.subr.bf16.mxu1 %v2030_v33  ;;  %v2123_v31 = vld [vmem:[%s2697_s18 + $0x70] ss:$8 sps:$4 sm:$0xff]   ;;  %s2766_s24 = scalar_lea.vmem [#allocation10], %s2685_s12  ;;  %s2770_s14 = scalar_lea.vmem [#allocation11], %s2685_s12 }
  0xc9   : > { %v458_v33 = vshrl.u32 %v457_v32, 7  ;;  %s3011_s21 = sld [smem:[#allocation20_spill]]  ;;  %s1865_s6 = sshll.u32 %s2366_s27, 5 }
  0xca   : > { %724 = vmatpush1.bf16.msra.mxu0 %v2032_v34  ;;  %s1479_s23 = sshll.u32 %s2766_s24, 4  ;;  %s3013_s10 = sld [smem:[#allocation26_spill]]  ;;  %s2867_s23 = int_to_ptr.vmem [resolvable:$true] %s1479_s23 }
  0xcb   : > { %1249 = vmatpush1.bf16.msra.mxu1 %v2033_v35  ;;  %725 = vmatprep.subr.bf16.mxu0 %v2034_v36  ;;  %v459_v34 = vsub.s32 0, %v458_v33  ;;  %v455_v35 = vld [vmem:[%s2965_s3] sm:$0x3]  ;;  %s1498_s19 = sshll.u32 %s2770_s14, 4  ;;  %s3014_s11 = sld [smem:[#allocation27_spill]]  ;;  %s2876_s19 = int_to_ptr.vmem [resolvable:$true] %s1498_s19 }
  0xcc   : > { %1250 = vmatprep.subr.bf16.mxu1 %v2036_v37  ;;  %v980_v36 = vld [vmem:[%s2967_s5] sm:$0x3]  ;;  %v463_v37 = vsub.s32 1, %v458_v33  ;;  %s1458_s15 = scalar_lea.sflag [#allocation4], %s2682_s20 }
  0xce   : > { %726 = vmatpush1.bf16.msra.mxu0 %v2038_v38  ;;  %v2749_v38 = vrot.slane %v455_v35, %v459_v34 }
  0xcf   : > { %1251 = vmatpush1.bf16.msra.mxu1 %v2039_v39  ;;  %727 = vmatprep.subr.bf16.mxu0 %v2040_v40  ;;  %v2751_v39 = vrot.slane %v980_v36, %v459_v34  ;;  %v2753_v40 = vrot.slane %v455_v35, %v463_v37  ;;  %s1823_s2 = sshll.u32 %s3011_s21, 6  ;;  %s2240_s21 = scalar_lea.vmem %s2867_s23, 2048 }
  0xd0   : > { %1252 = vmatprep.subr.bf16.mxu1 %v2042_v41  ;;  %v2755_v41 = vrot.slane %v980_v36, %v463_v37  ;;  %s2847_s28 = sadd.s32 %s1865_s6, %s1823_s2  ;;  %p2241_p1 = scmp.ne.s32.totalorder %s2867_s23, %s2240_s21 }
  0xd1   : > { %s1824_s27 = sshll.u32 %s2847_s28, 6  ;;  %s2390_s6 = smov [#allocation10]  }
  0xd2   : > { %728 = vmatpush1.bf16.msra.mxu0 %v2044_v42  ;;  %s2864_s13 = scalar_lea.hbm %s3013_s10, %s1824_s27  ;;  %s2874_s17 = scalar_lea.hbm %s3014_s11, %s1824_s27 }
  0xd3   : > { %1253 = vmatpush1.bf16.msra.mxu1 %v2045_v43  ;;  %729 = vmatprep.subr.bf16.mxu0 %v2046_v44  ;;  %p2242_p2 = pnand %p2241_p1, %p2578_p8  ;;  %s2244_s2 = sshll.u32 %s2390_s6, 4  ;;  %s2245_s2 = int_to_ptr.vmem [resolvable:$false] %s2244_s2 }
  0xd4   : > { %1254 = vmatprep.subr.bf16.mxu1 %v2048_v45  ;;  %s2246_s28 = scalar_lea.vmem %s2245_s2, 4096  ;;  %p2247_p4 = scmp.lt.s32.totalorder %s2867_s23, %s2245_s2 }
  0xd5   : > { %p2243_p9 = pneg %p2242_p2  ;;  %p2248_p6 = scmp.lt.s32.totalorder %s2246_s28, %s2240_s21 }
  0xd6   : > { %730 = vmatpush1.bf16.msra.mxu0 %v2050_v46 }
  0xd7   : > { %1255 = vmatpush1.bf16.msra.mxu1 %v2051_v47  ;;  %731 = vmatprep.subr.bf16.mxu0 %v2052_v48  ;;  %p2249_p11 = por %p2248_p6, %p2247_p4 }
  0xd8   : > { %1256 = vmatprep.subr.bf16.mxu1 %v2054_v50 }
  0xd9   : > { %p2250_p13 = pnand %p2249_p11, %p2243_p9 }
  0xda   : > { %732 = vmatpush1.bf16.msra.mxu0 %v2056_v52 }
  0xdb   : > { %1257 = vmatpush1.bf16.msra.mxu1 %v2057_v53  ;;  %733 = vmatprep.subr.bf16.mxu0 %v2058_v54 }
  0xdc   : > { %1258 = vmatprep.subr.bf16.mxu1 %v2060_v55 }
  0xde   : > { %734 = vmatpush1.bf16.msra.mxu0 %v2062_v56 }
  0xdf   : > { %1259 = vmatpush1.bf16.msra.mxu1 %v2063_v57  ;;  %735 = vmatprep.subr.bf16.mxu0 %v2064_v58 }
  0xe0   : > { %1260 = vmatprep.subr.bf16.mxu1 %v2066_v59 }
  0xe2   : > { %736 = vmatpush1.bf16.msra.mxu0 %v2068_v60 }
  0xe3   : > { %1261 = vmatpush1.bf16.msra.mxu1 %v2069_v61  ;;  %737 = vmatprep.subr.bf16.mxu0 %v2070_v62 }
  0xe4   : > { %1262 = vmatprep.subr.bf16.mxu1 %v2072_v63 }
  0xe6   : > { %738 = vmatpush1.bf16.msra.mxu0 %v2074_v0 }
  0xe7   : > { %1263 = vmatpush1.bf16.msra.mxu1 %v2075_v1 }
  0xe9   : > { %740 = vmatmul.mubr.bf16.vlgmr.msra.gmra.mrb[0].mxu0 %v2076_v2 }
  0xea   : > { %1265 = vmatmul.mubr.bf16.vlgmr.msra.gmra.mrb[0].mxu1 %v2079_v3  ;;  %749 = vmatprep.mubr.bf16.mxu0 %v2082_v4 }
  0xeb   : > { %1274 = vmatprep.mubr.bf16.mxu1 %v2084_v5 }
  0xf1   : > { %750 = vmatmul.mubr.bf16.gmra.mrb[4].mxu0 %v2086_v6 }
  0xf2   : > { %1275 = vmatmul.mubr.bf16.gmra.mrb[4].mxu1 %v2087_v7  ;;  %759 = vmatprep.mubr.bf16.mxu0 %v2088_v8 }
  0xf3   : > { %1284 = vmatprep.mubr.bf16.mxu1 %v2090_v9 }
  0xf9   : > { %760 = vmatmul.mubr.bf16.gmra.mrb[8].mxu0 %v2092_v10 }
  0xfa   : > { %1285 = vmatmul.mubr.bf16.gmra.mrb[8].mxu1 %v2093_v11  ;;  %769 = vmatprep.mubr.bf16.mxu0 %v2094_v12 }
  0xfb   : > { %1294 = vmatprep.mubr.bf16.mxu1 %v2096_v13 }
 0x101   : > { %770 = vmatmul.mubr.bf16.gmra.mrb[12].mxu0 %v2098_v14 }
 0x102   : > { %1295 = vmatmul.mubr.bf16.gmra.mrb[12].mxu1 %v2099_v15  ;;  %779 = vmatprep.mubr.bf16.mxu0 %v2100_v16 }
 0x103   : > { %1304 = vmatprep.mubr.bf16.mxu1 %v2102_v17 }
 0x109   : > { %780 = vmatmul.mubr.bf16.gmra.mrb[16].mxu0 %v2104_v18 }
 0x10a   : > { %1305 = vmatmul.mubr.bf16.gmra.mrb[16].mxu1 %v2105_v19  ;;  %789 = vmatprep.mubr.bf16.mxu0 %v2106_v20 }
 0x10b   : > { %1314 = vmatprep.mubr.bf16.mxu1 %v2108_v21 }
 0x111   : > { %790 = vmatmul.mubr.bf16.gmra.mrb[20].mxu0 %v2110_v22 }
 0x112   : > { %1315 = vmatmul.mubr.bf16.gmra.mrb[20].mxu1 %v2111_v23  ;;  %799 = vmatprep.mubr.bf16.mxu0 %v2112_v24 }
 0x113   : > { %1324 = vmatprep.mubr.bf16.mxu1 %v2114_v25 }
 0x119   : > { %800 = vmatmul.mubr.bf16.gmra.mrb[24].mxu0 %v2116_v26 }
 0x11a   : > { %1325 = vmatmul.mubr.bf16.gmra.mrb[24].mxu1 %v2117_v27  ;;  %809 = vmatprep.mubr.bf16.mxu0 %v2118_v28 }
 0x11b   : > { %1334 = vmatprep.mubr.bf16.mxu1 %v2120_v29 }
 0x121   : > { %810 = vmatmul.mubr.bf16.gmra.mrb[28].mxu0 %v2122_v30 }
 0x122   : > { %1335 = vmatmul.mubr.bf16.gmra.mrb[28].mxu1 %v2123_v31 }
 0x1bc   : > { %v741_v42 = vpop.f32.mrb[0].mxu0 }
 0x1bd   : > { %v1266_v43 = vpop.f32.mrb[0].mxu1  ;;  %v742_v44 = vadd.f32 %v741_v42, %v2749_v38  ;;  %v743_v46 = vpop.f32.mrb[1].mxu0 }
 0x1be   : > { %v1267_v45 = vadd.f32 %v1266_v43, %v2751_v39  ;;  %v1268_v47 = vpop.f32.mrb[1].mxu1  ;;  %v744_v48 = vadd.f32 %v743_v46, %v2753_v40  ;;  %v745_v50 = vpop.f32.mrb[2].mxu0 }
 0x1bf   : > { %v1269_v49 = vadd.f32 %v1268_v47, %v2755_v41  ;;  %v1270_v51 = vpop.f32.mrb[2].mxu1  ;;  %v746_v52 = vadd.f32 %v745_v50, %v2749_v38  ;;  %v747_v54 = vpop.f32.mrb[3].mxu0 }
 0x1c0   : > { %v1271_v53 = vadd.f32 %v1270_v51, %v2751_v39  ;;  %v1272_v55 = vpop.f32.mrb[3].mxu1  ;;  %v1833_v56 = vpack.c.bf16 %v744_v48, %v742_v44  ;;  %v748_v58 = vadd.f32 %v747_v54, %v2753_v40 }
 0x1c1   : > { %v1849_v57 = vpack.c.bf16 %v1269_v49, %v1267_v45  ;;  %v1273_v59 = vadd.f32 %v1272_v55, %v2755_v41 }
 0x1c2   : > { %916 = vst [vmem:[%s2766_s24] sm:$0xff] %v1833_v56  ;;  %v1834_v60 = vpack.c.bf16 %v748_v58, %v746_v52 }
 0x1c3   : > { %1441 = vst [vmem:[%s2770_s14] sm:$0xff] %v1849_v57  ;;  %v1850_v61 = vpack.c.bf16 %v1273_v59, %v1271_v53 }
 0x1c4   : > { %917 = vst [vmem:[%s2766_s24 + $0x8] sm:$0xff] %v1834_v60  ;;  %v751_v62 = vpop.f32.mrb[4].mxu0 }
 0x1c5   : > { %1442 = vst [vmem:[%s2770_s14 + $0x8] sm:$0xff] %v1850_v61  ;;  %v1276_v63 = vpop.f32.mrb[4].mxu1  ;;  %v752_v0 = vadd.f32 %v751_v62, %v2749_v38  ;;  %v753_v2 = vpop.f32.mrb[5].mxu0 }
 0x1c6   : > { %v1277_v1 = vadd.f32 %v1276_v63, %v2751_v39  ;;  %v1278_v3 = vpop.f32.mrb[5].mxu1  ;;  %v754_v4 = vadd.f32 %v753_v2, %v2753_v40  ;;  %v755_v6 = vpop.f32.mrb[6].mxu0 }
 0x1c7   : > { %v1279_v5 = vadd.f32 %v1278_v3, %v2755_v41  ;;  %v1280_v7 = vpop.f32.mrb[6].mxu1  ;;  %v756_v8 = vadd.f32 %v755_v6, %v2749_v38  ;;  %v757_v10 = vpop.f32.mrb[7].mxu0 }
 0x1c8   : > { %v1281_v9 = vadd.f32 %v1280_v7, %v2751_v39  ;;  %v1282_v11 = vpop.f32.mrb[7].mxu1  ;;  %v1835_v12 = vpack.c.bf16 %v754_v4, %v752_v0  ;;  %v758_v14 = vadd.f32 %v757_v10, %v2753_v40 }
 0x1c9   : > { %v1851_v13 = vpack.c.bf16 %v1279_v5, %v1277_v1  ;;  %v1283_v15 = vadd.f32 %v1282_v11, %v2755_v41 }
 0x1ca   : > { %918 = vst [vmem:[%s2766_s24 + $0x10] sm:$0xff] %v1835_v12  ;;  %v1836_v16 = vpack.c.bf16 %v758_v14, %v756_v8 }
 0x1cb   : > { %1443 = vst [vmem:[%s2770_s14 + $0x10] sm:$0xff] %v1851_v13  ;;  %v1852_v17 = vpack.c.bf16 %v1283_v15, %v1281_v9 }
 0x1cc   : > { %919 = vst [vmem:[%s2766_s24 + $0x18] sm:$0xff] %v1836_v16  ;;  %v761_v18 = vpop.f32.mrb[8].mxu0 }
 0x1cd   : > { %1444 = vst [vmem:[%s2770_s14 + $0x18] sm:$0xff] %v1852_v17  ;;  %v1286_v19 = vpop.f32.mrb[8].mxu1  ;;  %v762_v20 = vadd.f32 %v761_v18, %v2749_v38  ;;  %v763_v22 = vpop.f32.mrb[9].mxu0 }
 0x1ce   : > { %v1287_v21 = vadd.f32 %v1286_v19, %v2751_v39  ;;  %v1288_v23 = vpop.f32.mrb[9].mxu1  ;;  %v764_v24 = vadd.f32 %v763_v22, %v2753_v40  ;;  %v765_v26 = vpop.f32.mrb[10].mxu0 }
 0x1cf   : > { %v1289_v25 = vadd.f32 %v1288_v23, %v2755_v41  ;;  %v1290_v27 = vpop.f32.mrb[10].mxu1  ;;  %v766_v28 = vadd.f32 %v765_v26, %v2749_v38  ;;  %v767_v30 = vpop.f32.mrb[11].mxu0 }
 0x1d0   : > { %v1291_v29 = vadd.f32 %v1290_v27, %v2751_v39  ;;  %v1292_v31 = vpop.f32.mrb[11].mxu1  ;;  %v1837_v32 = vpack.c.bf16 %v764_v24, %v762_v20  ;;  %v768_v34 = vadd.f32 %v767_v30, %v2753_v40 }
 0x1d1   : > { %v1853_v33 = vpack.c.bf16 %v1289_v25, %v1287_v21  ;;  %v1293_v35 = vadd.f32 %v1292_v31, %v2755_v41 }
 0x1d2   : > { %920 = vst [vmem:[%s2766_s24 + $0x20] sm:$0xff] %v1837_v32  ;;  %v1838_v36 = vpack.c.bf16 %v768_v34, %v766_v28 }
 0x1d3   : > { %1445 = vst [vmem:[%s2770_s14 + $0x20] sm:$0xff] %v1853_v33  ;;  %v1854_v37 = vpack.c.bf16 %v1293_v35, %v1291_v29 }
 0x1d4   : > { %921 = vst [vmem:[%s2766_s24 + $0x28] sm:$0xff] %v1838_v36  ;;  %v771_v42 = vpop.f32.mrb[12].mxu0 }
 0x1d5   : > { %1446 = vst [vmem:[%s2770_s14 + $0x28] sm:$0xff] %v1854_v37  ;;  %v1296_v43 = vpop.f32.mrb[12].mxu1  ;;  %v772_v44 = vadd.f32 %v771_v42, %v2749_v38  ;;  %v773_v46 = vpop.f32.mrb[13].mxu0 }
 0x1d6   : > { %v1297_v45 = vadd.f32 %v1296_v43, %v2751_v39  ;;  %v1298_v47 = vpop.f32.mrb[13].mxu1  ;;  %v774_v48 = vadd.f32 %v773_v46, %v2753_v40  ;;  %v775_v50 = vpop.f32.mrb[14].mxu0 }
 0x1d7   : > { %v1299_v49 = vadd.f32 %v1298_v47, %v2755_v41  ;;  %v1300_v51 = vpop.f32.mrb[14].mxu1  ;;  %v776_v52 = vadd.f32 %v775_v50, %v2749_v38  ;;  %v777_v54 = vpop.f32.mrb[15].mxu0 }
 0x1d8   : > { %v1301_v53 = vadd.f32 %v1300_v51, %v2751_v39  ;;  %v1302_v55 = vpop.f32.mrb[15].mxu1  ;;  %v1839_v56 = vpack.c.bf16 %v774_v48, %v772_v44  ;;  %v778_v58 = vadd.f32 %v777_v54, %v2753_v40 }
 0x1d9   : > { %v1855_v57 = vpack.c.bf16 %v1299_v49, %v1297_v45  ;;  %v1303_v59 = vadd.f32 %v1302_v55, %v2755_v41 }
 0x1da   : > { %922 = vst [vmem:[%s2766_s24 + $0x30] sm:$0xff] %v1839_v56  ;;  %v1840_v60 = vpack.c.bf16 %v778_v58, %v776_v52 }
 0x1db   : > { %1447 = vst [vmem:[%s2770_s14 + $0x30] sm:$0xff] %v1855_v57  ;;  %v1856_v61 = vpack.c.bf16 %v1303_v59, %v1301_v53 }
 0x1dc   : > { %923 = vst [vmem:[%s2766_s24 + $0x38] sm:$0xff] %v1840_v60  ;;  %v781_v62 = vpop.f32.mrb[16].mxu0 }
 0x1dd   : > { %1448 = vst [vmem:[%s2770_s14 + $0x38] sm:$0xff] %v1856_v61  ;;  %v1306_v63 = vpop.f32.mrb[16].mxu1  ;;  %v782_v0 = vadd.f32 %v781_v62, %v2749_v38  ;;  %v783_v2 = vpop.f32.mrb[17].mxu0 }
 0x1de   : > { %v1307_v1 = vadd.f32 %v1306_v63, %v2751_v39  ;;  %v1308_v3 = vpop.f32.mrb[17].mxu1  ;;  %v784_v4 = vadd.f32 %v783_v2, %v2753_v40  ;;  %v785_v6 = vpop.f32.mrb[18].mxu0 }
 0x1df   : > { %v1309_v5 = vadd.f32 %v1308_v3, %v2755_v41  ;;  %v1310_v7 = vpop.f32.mrb[18].mxu1  ;;  %v786_v8 = vadd.f32 %v785_v6, %v2749_v38  ;;  %v787_v10 = vpop.f32.mrb[19].mxu0 }
 0x1e0   : > { %v1311_v9 = vadd.f32 %v1310_v7, %v2751_v39  ;;  %v1312_v11 = vpop.f32.mrb[19].mxu1  ;;  %v1841_v12 = vpack.c.bf16 %v784_v4, %v782_v0  ;;  %v788_v14 = vadd.f32 %v787_v10, %v2753_v40 }
 0x1e1   : > { %v1857_v13 = vpack.c.bf16 %v1309_v5, %v1307_v1  ;;  %v1313_v15 = vadd.f32 %v1312_v11, %v2755_v41 }
 0x1e2   : > { %924 = vst [vmem:[%s2766_s24 + $0x40] sm:$0xff] %v1841_v12  ;;  %v1842_v16 = vpack.c.bf16 %v788_v14, %v786_v8 }
 0x1e3   : > { %1449 = vst [vmem:[%s2770_s14 + $0x40] sm:$0xff] %v1857_v13  ;;  %v1858_v17 = vpack.c.bf16 %v1313_v15, %v1311_v9 }
 0x1e4   : > { %925 = vst [vmem:[%s2766_s24 + $0x48] sm:$0xff] %v1842_v16  ;;  %v791_v18 = vpop.f32.mrb[20].mxu0 }
 0x1e5   : > { %1450 = vst [vmem:[%s2770_s14 + $0x48] sm:$0xff] %v1858_v17  ;;  %v1316_v19 = vpop.f32.mrb[20].mxu1  ;;  %v792_v20 = vadd.f32 %v791_v18, %v2749_v38  ;;  %v793_v22 = vpop.f32.mrb[21].mxu0 }
 0x1e6   : > { %v1317_v21 = vadd.f32 %v1316_v19, %v2751_v39  ;;  %v1318_v23 = vpop.f32.mrb[21].mxu1  ;;  %v794_v24 = vadd.f32 %v793_v22, %v2753_v40  ;;  %v795_v26 = vpop.f32.mrb[22].mxu0 }
 0x1e7   : > { %v1319_v25 = vadd.f32 %v1318_v23, %v2755_v41  ;;  %v1320_v27 = vpop.f32.mrb[22].mxu1  ;;  %v796_v28 = vadd.f32 %v795_v26, %v2749_v38  ;;  %v797_v30 = vpop.f32.mrb[23].mxu0 }
 0x1e8   : > { %v1321_v29 = vadd.f32 %v1320_v27, %v2751_v39  ;;  %v1322_v31 = vpop.f32.mrb[23].mxu1  ;;  %v1843_v32 = vpack.c.bf16 %v794_v24, %v792_v20  ;;  %v798_v34 = vadd.f32 %v797_v30, %v2753_v40 }
 0x1e9   : > { %v1859_v33 = vpack.c.bf16 %v1319_v25, %v1317_v21  ;;  %v1323_v35 = vadd.f32 %v1322_v31, %v2755_v41 }
 0x1ea   : > { %926 = vst [vmem:[%s2766_s24 + $0x50] sm:$0xff] %v1843_v32  ;;  %v1844_v36 = vpack.c.bf16 %v798_v34, %v796_v28 }
 0x1eb   : > { %1451 = vst [vmem:[%s2770_s14 + $0x50] sm:$0xff] %v1859_v33  ;;  %v1860_v37 = vpack.c.bf16 %v1323_v35, %v1321_v29 }
 0x1ec   : > { %927 = vst [vmem:[%s2766_s24 + $0x58] sm:$0xff] %v1844_v36  ;;  %v801_v42 = vpop.f32.mrb[24].mxu0 }
 0x1ed   : > { %1452 = vst [vmem:[%s2770_s14 + $0x58] sm:$0xff] %v1860_v37  ;;  %v1326_v43 = vpop.f32.mrb[24].mxu1  ;;  %v802_v44 = vadd.f32 %v801_v42, %v2749_v38  ;;  %v803_v46 = vpop.f32.mrb[25].mxu0 }
 0x1ee   : > { %v1327_v45 = vadd.f32 %v1326_v43, %v2751_v39  ;;  %v1328_v47 = vpop.f32.mrb[25].mxu1  ;;  %v804_v48 = vadd.f32 %v803_v46, %v2753_v40  ;;  %v805_v50 = vpop.f32.mrb[26].mxu0 }
 0x1ef   : > { %v1329_v49 = vadd.f32 %v1328_v47, %v2755_v41  ;;  %v1330_v51 = vpop.f32.mrb[26].mxu1  ;;  %v806_v52 = vadd.f32 %v805_v50, %v2749_v38  ;;  %v807_v54 = vpop.f32.mrb[27].mxu0 }
 0x1f0   : > { %v1331_v53 = vadd.f32 %v1330_v51, %v2751_v39  ;;  %v1332_v55 = vpop.f32.mrb[27].mxu1  ;;  %v1845_v56 = vpack.c.bf16 %v804_v48, %v802_v44  ;;  %v808_v58 = vadd.f32 %v807_v54, %v2753_v40 }
 0x1f1   : > { %v1861_v57 = vpack.c.bf16 %v1329_v49, %v1327_v45  ;;  %v1333_v59 = vadd.f32 %v1332_v55, %v2755_v41 }
 0x1f2   : > { %928 = vst [vmem:[%s2766_s24 + $0x60] sm:$0xff] %v1845_v56  ;;  %v1846_v60 = vpack.c.bf16 %v808_v58, %v806_v52 }
 0x1f3   : > { %1453 = vst [vmem:[%s2770_s14 + $0x60] sm:$0xff] %v1861_v57  ;;  %v1862_v61 = vpack.c.bf16 %v1333_v59, %v1331_v53 }
 0x1f4   : > { %929 = vst [vmem:[%s2766_s24 + $0x68] sm:$0xff] %v1846_v60  ;;  %v811_v62 = vpop.f32.mrb[28].mxu0 }
 0x1f5   : > { %1454 = vst [vmem:[%s2770_s14 + $0x68] sm:$0xff] %v1862_v61  ;;  %v1336_v63 = vpop.f32.mrb[28].mxu1  ;;  %v812_v0 = vadd.f32 %v811_v62, %v2749_v38  ;;  %v813_v2 = vpop.f32.mrb[29].mxu0 }
 0x1f6   : > { %v1337_v1 = vadd.f32 %v1336_v63, %v2751_v39  ;;  %v1338_v3 = vpop.f32.mrb[29].mxu1  ;;  %v814_v4 = vadd.f32 %v813_v2, %v2753_v40  ;;  %v815_v6 = vpop.f32.mrb[30].mxu0 }
 0x1f7   : > { %v1339_v5 = vadd.f32 %v1338_v3, %v2755_v41  ;;  %v1340_v7 = vpop.f32.mrb[30].mxu1  ;;  %v816_v8 = vadd.f32 %v815_v6, %v2749_v38  ;;  %v817_v10 = vpop.f32.mrb[31].mxu0 }
 0x1f8   : > { %v1341_v9 = vadd.f32 %v1340_v7, %v2751_v39  ;;  %v1342_v11 = vpop.f32.mrb[31].mxu1  ;;  %v1847_v12 = vpack.c.bf16 %v814_v4, %v812_v0  ;;  %v818_v14 = vadd.f32 %v817_v10, %v2753_v40 }
 0x1f9   : > { %v1863_v13 = vpack.c.bf16 %v1339_v5, %v1337_v1  ;;  %v1343_v15 = vadd.f32 %v1342_v11, %v2755_v41 }
 0x1fa   : > { %930 = vst [vmem:[%s2766_s24 + $0x70] sm:$0xff] %v1847_v12  ;;  %v1848_v38 = vpack.c.bf16 %v818_v14, %v816_v8 }
 0x1fb   : > { %1455 = vst [vmem:[%s2770_s14 + $0x70] sm:$0xff] %v1863_v13  ;;  %v1864_v39 = vpack.c.bf16 %v1343_v15, %v1341_v9 }
 0x1fc   : > { %931 = vst [vmem:[%s2766_s24 + $0x78] sm:$0xff] %v1848_v38 }
 0x1fd   : > { %1456 = vst [vmem:[%s2770_s14 + $0x78] sm:$0xff] %v1864_v39 }
 0x1fe   : > { %2253 = shalt.err (!%p2250_p13)
}
 0x1ff   : > { %s2254_s24 = scalar_lea.hbm %s2864_s13, 2048  ;;  %s2258_s12 = scalar_lea.hbm %s3013_s10, 8192 }
 0x200   : > { %p2255_p5 = scmp.ne.s32.totalorder %s2864_s13, %s2254_s24  ;;  %p2259_p3 = scmp.lt.u32.totalorder %s2864_s13, %s3013_s10 }
 0x201   : > { %p2260_p7 = scmp.lt.u32.totalorder %s2258_s12, %s2254_s24  ;;  %p2262_p1 = scmp.lt.u32.totalorder %s2254_s24, %s2864_s13 }
 0x202   : > { %p2256_p10 = pnand %p2255_p5, %p2578_p8 }
 0x203   : > { %p2261_p12 = por %p2260_p7, %p2259_p3 }
 0x204   : > { %p2257_p0 = pneg %p2256_p10 }
 0x205   : > { %p2263_p2 = por %p2262_p1, %p2261_p12 }
 0x207   : > { %p2264_p9 = pnand %p2263_p2, %p2257_p0 }
 0x209   : > { %2267 = shalt.err (!%p2264_p9)
}
 0x20a   : > { %s2391_s9 = smov 128   ;;  %s2392_s21 = smov 8  }
 0x20b   : > { %1879 = dma.vmem_to_hbm [thread:$0]  (%p2578_p8), %s2867_s23, 2048, %s2864_s13, %s1458_s15, %s2391_s9, %s2391_s9, %s2392_s21  }
 0x20c   : > { %s1463_s6 = scalar_lea.sflag [#allocation12], %s2682_s20  ;;  %s2268_s2 = scalar_lea.vmem %s2876_s19, 2048 }
 0x20d   : > { %p2269_p4 = scmp.ne.s32.totalorder %s2876_s19, %s2268_s2  ;;  %s2393_s28 = smov [#allocation11]  }
 0x20e   : > { %s2272_s24 = sshll.u32 %s2393_s28, 4  ;;  %s2273_s24 = int_to_ptr.vmem [resolvable:$false] %s2272_s24 }
 0x20f   : > { %p2270_p6 = pnand %p2269_p4, %p2578_p8  ;;  %s2274_s14 = scalar_lea.vmem %s2273_s24, 4096 }
 0x210   : > { %p2275_p13 = scmp.lt.s32.totalorder %s2876_s19, %s2273_s24  ;;  %p2276_p5 = scmp.lt.s32.totalorder %s2274_s14, %s2268_s2 }
 0x211   : > { %p2271_p11 = pneg %p2270_p6 }
 0x212   : > { %p2277_p10 = por %p2276_p5, %p2275_p13 }
 0x214   : > { %p2278_p0 = pnand %p2277_p10, %p2271_p11 }
 0x216   : > { %2281 = shalt.err (!%p2278_p0)
}
 0x217   : > { %s2282_s23 = scalar_lea.hbm %s2874_s17, 2048  ;;  %s2286_s27 = scalar_lea.hbm %s3014_s11, 8192 }
 0x218   : > { %p2283_p3 = scmp.ne.s32.totalorder %s2874_s17, %s2282_s23  ;;  %p2287_p1 = scmp.lt.u32.totalorder %s2874_s17, %s3014_s11 }
 0x219   : > { %p2288_p2 = scmp.lt.u32.totalorder %s2286_s27, %s2282_s23  ;;  %p2290_p4 = scmp.lt.u32.totalorder %s2282_s23, %s2874_s17 }
 0x21a   : > { %p2284_p7 = pnand %p2283_p3, %p2578_p8 }
 0x21b   : > { %p2289_p9 = por %p2288_p2, %p2287_p1 }
 0x21c   : > { %p2285_p12 = pneg %p2284_p7 }
 0x21d   : > { %p2291_p6 = por %p2290_p4, %p2289_p9 }
 0x21f   : > { %p2292_p11 = pnand %p2291_p6, %p2285_p12 }
 0x221   : > { %2295 = shalt.err (!%p2292_p11)
}
 0x222   : > { %1880 = dma.vmem_to_hbm [thread:$0]  (%p2578_p8), %s2876_s19, 2048, %s2874_s17, %s1463_s6, %s2391_s9, %s2391_s9, %s2392_s21  }
 0x223 PF: > { %s3015_s18 = sld [smem:[#allocation19_spill]]  ;;  %s3016_s2 = sld [smem:[#allocation21_spill]] }
 0x224   : > { %p1909_p13 = scmp.ge.s32.totalorder %s2382_s8, 2 }
 0x229   : > { %s1513_s28 = sand.u32 1, %s3015_s18   ;;  %p3017_p5 = scmp.ne.s32.totalorder %s3016_s2, 0 }
 0x22a   : > { %s1514_s24 = scalar_lea.sflag [#allocation4], %s1513_s28 }
 0x22b   : > { %p1898_p10 = pnand %p1909_p13, %p3017_p5 }
 0x22d   : > { %2345 = dma.done.wait (!%p1898_p10), %s1514_s24, 2048  }
 0x22e   : > { %2347 = vsyncadd (!%p1898_p10), %s1514_s24, 4294965248  ;;  %s1523_s7 = scalar_lea.sflag [#allocation12], %s1513_s28 }
 0x22f   : > { %2349 = dma.done.wait (!%p1898_p10), %s1523_s7, 2048  }
 0x230   : > { %2351 = vsyncadd (!%p1898_p10), %s1523_s7, 4294965248  ;;  %s31_s8 = sadd.s32 1, %s2382_s8   ;;  %s3018_s20 = sld [smem:[#allocation22_spill]] }
 0x231   : > { %p28_p0 = scmp.ge.s32.totalorder %s31_s8, 6   ;;  %s3019_s24 = smov %s2358_s25 }
 0x232   : > { %s3020_s25 = smov %s2362_s26  ;;  %s3021_s26 = smov %s2591_s4 }
 0x233   : > { %s3022_s27 = smov %s2374_s29  ;;  %s3023_s28 = smov %s2378_s30 }
 0x234   : > { %s3025_s30 = smov %s3031_s16  ;;  %30 = sbr.rel (!%p28_p0) target bundleno = 17 (0x11), region = 127 }
 0x236   : > { %s3024_s29 = smov %s3018_s20 }
 0x23b   :  { %1528 = vsyncpa [#allocation3], 1 }
 0x23c   :  { %1530 = vsyncpa [#allocation3 + $0x1], 1 }
 0x23d   :  { %1531 = vsyncpa [#allocation6], 1 }
 0x23e   :  { %1533 = vsyncpa [#allocation6 + $0x1], 1 }
 0x23f   :  { %1534 = vsyncpa [#allocation9], 1 }
 0x240   :  { %1535 = vsyncpa [#allocation4], 1 }
 0x241   :  { %1537 = vsyncpa [#allocation4 + $0x1], 1 }
 0x242   :  { %1538 = vsyncpa [#allocation12], 1 }
 0x243   :  { %1540 = vsyncpa [#allocation12 + $0x1], 1 }

</bundles_post_ra>
